<compile_context>
chip_gen: v6e
topology: v6e:2x2x1
jax: 0.10.0
libtpu: 0.0.40
codegen_flags: <defaults>
</compile_context>

<pallas_src>
import functools
import math

import jax
import jax.numpy as jnp
from jax import lax
from jax.experimental import pallas as pl
from jax.experimental.pallas import tpu as pltpu


# ----------------------------- kernels --------------------------------------

def _replicate_pe_lanes(pe, batch):
    """(ts, D) -> (ts, batch*D) by repeating along lanes (matches (S,B,D) flatten)."""
    if batch == 1:
        return pe
    # Lane-dim concatenate; for D a multiple of 128 this is aligned vreg copies,
    # otherwise lane shifts — either way XLU/VPU filler under the memory bound.
    return jnp.concatenate([pe] * batch, axis=-1)


def _posenc_eval_kernel(x_ref, pe_ref, o_ref, *, batch):
    # x_ref: (ts, B*D), pe_ref: (ts, D)
    o_ref[...] = x_ref[...] + _replicate_pe_lanes(pe_ref[...], batch)


# Hash constants (two's-complement int32 views of the usual uint32 constants).
_C_GOLD = -1640531527   # 0x9E3779B9
_C_MIX1 = -2048144789   # 0x85EBCA6B
_C_MIX2 = -1028477587   # 0xC2B2AE35
_I32_MIN = -2147483648  # 0x80000000


def _hash_bits_i32(lin, seed):
    """Murmur3-style finalizer over int32 (wrapping arithmetic); well-mixed bits."""
    h = lin * jnp.int32(_C_GOLD) + seed
    h = h ^ lax.shift_right_logical(h, 16)
    h = h * jnp.int32(_C_MIX1)
    h = h ^ lax.shift_right_logical(h, 13)
    h = h * jnp.int32(_C_MIX2)
    h = h ^ lax.shift_right_logical(h, 16)
    return h


def _posenc_train_kernel(seed_ref, x_ref, pe_ref, o_ref, *, batch, dropout_p):
    # seed_ref: scalar-prefetch (SMEM) int32[1]; x_ref: (ts, B*D); pe_ref: (ts, D).
    y = x_ref[...] + _replicate_pe_lanes(pe_ref[...], batch)

    ts, bd = x_ref.shape
    # Global element index -> grid-invariant dropout mask (independent of tiling).
    row = lax.broadcasted_iota(jnp.int32, (ts, bd), 0) + pl.program_id(0) * ts
    col = lax.broadcasted_iota(jnp.int32, (ts, bd), 1)
    lin = row * jnp.int32(bd) + col

    bits = _hash_bits_i32(lin, seed_ref[0])

    keep_prob = 1.0 - dropout_p
    thr_u32 = min(int(keep_prob * 4294967296.0), 4294967295)
    # Unsigned compare via sign-bit flip:  a <u b  <=>  (a ^ 0x80000000) <s (b ^ 0x80000000)
    thr_flip = thr_u32 ^ 0x80000000
    thr_s32 = thr_flip - 4294967296 if thr_flip >= 2147483648 else thr_flip
    keep = (bits ^ jnp.int32(_I32_MIN)) < jnp.int32(thr_s32)

    # Inverted dropout, matching torch.nn.Dropout training semantics.
    scale = jnp.asarray(1.0 / keep_prob, dtype=y.dtype)
    o_ref[...] = jnp.where(keep, y * scale, jnp.zeros_like(y))


# ----------------------------- wrapper ---------------------------------------

def make_pe_table(d_model, max_len, dtype=jnp.float32):
    """Sinusoidal positional-encoding table, shape (max_len, d_model)."""
    position = jnp.arange(0, max_len, dtype=jnp.float32)[:, None]                 # (L, 1)
    div_term = jnp.exp(
        jnp.arange(0, d_model, 2, dtype=jnp.float32) * (-math.log(10000.0) / d_model)
    )                                                                             # (D/2,)
    pe = jnp.zeros((max_len, d_model), dtype=jnp.float32)
    pe = pe.at[:, 0::2].set(jnp.sin(position * div_term))
    pe = pe.at[:, 1::2].set(jnp.cos(position * div_term))
    return pe.astype(dtype)


def _choose_seq_tile(S, row_bytes, target_bytes=2 << 20):
    """Seq-tile so each (ts, B*D) block is ~2 MiB; total double-buffered VMEM ~8-10 MiB."""
    rows = max(1, target_bytes // max(1, row_bytes))
    if rows >= S:
        return S
    return max(8, (rows // 8) * 8)   # keep the sublane dim a multiple of 8


def positional_encoding(x, pe_table, *, dropout_p=0.1, training=False, seed=0):
    """
    x:        (seq_len, batch, d_model)
    pe_table: (max_len, d_model), max_len >= seq_len
    Returns x + pe[:seq_len] (broadcast over batch), with inverted dropout if training.
    """
    S, B, D = x.shape
    # Cast once in the wrapper so the in-kernel add stays in x's dtype.
    pe = pe_table[:S, :].astype(x.dtype)
    # Lane-dense view: free row-major reshape, fuses batch and d_model onto lanes.
    x2 = x.reshape(S, B * D)

    itemsize = jnp.dtype(x.dtype).itemsize
    ts = _choose_seq_tile(S, B * D * itemsize)
    grid = (pl.cdiv(S, ts),)
    out_shape = jax.ShapeDtypeStruct((S, B * D), x.dtype)
    cparams = pltpu.CompilerParams(
        dimension_semantics=("parallel",),
        vmem_limit_bytes=32 * 1024 * 1024,
    )

    if not training or dropout_p == 0.0:
        kernel = functools.partial(_posenc_eval_kernel, batch=B)
        out2 = pl.pallas_call(
            kernel,
            out_shape=out_shape,
            grid_spec=pltpu.PrefetchScalarGridSpec(
                num_scalar_prefetch=0,
                grid=grid,
                in_specs=[
                    pl.BlockSpec((ts, B * D), lambda i: (i, 0)),
                    pl.BlockSpec((ts, D), lambda i: (i, 0)),
                ],
                out_specs=pl.BlockSpec((ts, B * D), lambda i: (i, 0)),
            ),
            compiler_params=cparams,
        )(x2, pe)
        return out2.reshape(S, B, D)

    if dropout_p >= 1.0:
        # torch.nn.Dropout(p=1) zeroes everything in training mode.
        return jnp.zeros_like(x)

    kernel = functools.partial(_posenc_train_kernel, batch=B, dropout_p=dropout_p)
    seed_arr = jnp.asarray([seed], dtype=jnp.int32)
    out2 = pl.pallas_call(
        kernel,
        out_shape=out_shape,
        grid_spec=pltpu.PrefetchScalarGridSpec(
            num_scalar_prefetch=1,   # seed lands in SMEM; index_maps receive it too
            grid=grid,
            in_specs=[
                pl.BlockSpec((ts, B * D), lambda i, seed_ref: (i, 0)),
                pl.BlockSpec((ts, D), lambda i, seed_ref: (i, 0)),
            ],
            out_specs=pl.BlockSpec((ts, B * D), lambda i, seed_ref: (i, 0)),
        ),
        compiler_params=cparams,
    )(seed_arr, x2, pe)
    return out2.reshape(S, B, D)


# ------------------------------- demo -----------------------------------------

if __name__ == "__main__":
    # Small shapes consistent with the module's forward: [seq_len, batch, d_model]
    seq_len, batch, d_model = 8, 2, 32
    max_len = 64
    dropout_p = 0.1

    key = jax.random.PRNGKey(0)
    x = jax.random.normal(key, (seq_len, batch, d_model), dtype=jnp.float32)
    pe_table = make_pe_table(d_model, max_len)

    # Eval-mode forward (dropout is identity): deterministic, check vs reference.
    out = positional_encoding(x, pe_table, dropout_p=dropout_p, training=False)
    out = jax.block_until_ready(out)
    ref = x + pe_table[:seq_len][:, None, :]
    assert out.shape == (seq_len, batch, d_model)
    assert jnp.allclose(out, ref, atol=1e-6, rtol=1e-6)

    # Training-mode forward: every element is either 0 (dropped) or (x+pe)/keep_prob.
    out_train = positional_encoding(
        x, pe_table, dropout_p=dropout_p, training=True, seed=123
    )
    out_train = jax.block_until_ready(out_train)
    assert out_train.shape == (seq_len, batch, d_model)
    keep_prob = 1.0 - dropout_p
    scaled = ref * (1.0 / keep_prob)
    ok = jnp.isclose(out_train, scaled, atol=1e-5, rtol=1e-5) | (out_train == 0.0)
    assert bool(jnp.all(ok))

    print("KERNEL_OK")
</pallas_src>

<mosaic_0001>
module attributes {stable_mosaic.version = 11 : i64} {
  func.func @_posenc_eval_kernel(%arg0: i32, %arg1: memref<8x64xf32, #tpu.memory_space<vmem>>, %arg2: memref<8x32xf32, #tpu.memory_space<vmem>>, %arg3: memref<8x64xf32, #tpu.memory_space<vmem>>) attributes {dimension_semantics = [#tpu.dimension_semantics<parallel>], iteration_bounds = array<i64: 1>, scalar_prefetch = 0 : i64, scratch_operands = 0 : i64, tpu.core_type = #tpu.core_type<tc>, window_params = [{transform_indices = @transform_0, window_bounds = array<i64: 8, 64>}, {transform_indices = @transform_1, window_bounds = array<i64: 8, 32>}, {transform_indices = @transform_2, window_bounds = array<i64: 8, 64>}]} {
    %c0 = arith.constant 0 : index
    %c0_0 = arith.constant 0 : index
    %0 = vector.load %arg1[%c0, %c0_0] : memref<8x64xf32, #tpu.memory_space<vmem>>, vector<8x64xf32>
    %c0_1 = arith.constant 0 : index
    %c0_2 = arith.constant 0 : index
    %1 = vector.load %arg2[%c0_1, %c0_2] : memref<8x32xf32, #tpu.memory_space<vmem>>, vector<8x32xf32>
    %2 = tpu.concatenate %1, %1 in 1 : vector<8x32xf32>, vector<8x32xf32> -> vector<8x64xf32>
    %3 = arith.addf %0, %2 : vector<8x64xf32>
    %c0_3 = arith.constant 0 : index
    %c0_4 = arith.constant 0 : index
    %4 = vector.load %arg3[%c0_3, %c0_4] : memref<8x64xf32, #tpu.memory_space<vmem>>, vector<8x64xf32>
    tpu.vector_store %arg3[%c0_3, %c0_4], %3 {strides = array<i32>} : memref<8x64xf32, #tpu.memory_space<vmem>>, vector<8x64xf32>,
    return
  }
  func.func @transform_0(%arg0: i32) -> (i32, i32) {
    %c0_i32 = arith.constant 0 : i32
    %c0_i32_0 = arith.constant 0 : i32
    return %arg0, %c0_i32 : i32, i32
  }
  func.func @transform_1(%arg0: i32) -> (i32, i32) {
    %c0_i32 = arith.constant 0 : i32
    %c0_i32_0 = arith.constant 0 : i32
    return %arg0, %c0_i32 : i32, i32
  }
  func.func @transform_2(%arg0: i32) -> (i32, i32) {
    %c0_i32 = arith.constant 0 : i32
    %c0_i32_0 = arith.constant 0 : i32
    return %arg0, %c0_i32 : i32, i32
  }
}

</mosaic_0001>

<bundles_post_ra>
// kernel: tpu_custom_call.1
= control target key start
LH: loop header
LB: loop body
LE: loop exit
PB: predicated region body
PF: predicated region fallthrough
CT: control target
= control target key end

     0   :  { %7 = vsyncpa [#allocation3], 0  ;;  %s161_s0 = inlined_call_operand.hbm [shape: f32[8,64], index: 0, kind: input, shape index: {}]   ;;  %s162_s1 = inlined_call_operand.hbm [shape: f32[8,32], index: 1, kind: input, shape index: {}]   ;;  %s163_s2 = inlined_call_operand.hbm [shape: f32[8,64], index: 2, kind: output, shape index: {}]  }
   0x1   :  { %8 = vsyncpa [#allocation6], 0 }
   0x2   :  { %9 = vsyncpa [#allocation4], 0  ;;  %s133_s9 = smov [#allocation2]   ;;  %s134_s11 = smov [#allocation5]  }
   0x3   :  { %s16_s10 = sshll.u32 %s133_s9, 4  ;;  %s26_s12 = sshll.u32 %s134_s11, 4  ;;  %s17_s10 = int_to_ptr.vmem [resolvable:$true] %s16_s10  ;;  %s27_s12 = int_to_ptr.vmem [resolvable:$true] %s26_s12 }
   0x4   :  { %s75_s13 = scalar_lea.vmem %s17_s10, 128  ;;  %p80_p1 = scmp.lt.s32.totalorder %s17_s10, %s17_s10 }
   0x5   :  { %p76_p0 = scmp.ne.s32.totalorder %s17_s10, %s75_s13  ;;  %p81_p2 = scmp.lt.s32.totalorder %s75_s13, %s75_s13 }
   0x7   :  { %p82_p3 = por %p81_p2, %p80_p1 }
   0x9   :  { %p83_p4 = pnand %p82_p3, %p76_p0 }
   0xb   :  { %86 = shalt.err (!%p83_p4)
}
   0xc   :  { %19 = dma.hbm_to_vmem [thread:$0]  %s161_s0, 128, %s17_s10, [#allocation3]  }
   0xd   :  { %s95_s16 = scalar_lea.vmem %s27_s12, 128  ;;  %p100_p6 = scmp.lt.s32.totalorder %s27_s12, %s27_s12 }
   0xe   :  { %p96_p5 = scmp.ne.s32.totalorder %s27_s12, %s95_s16  ;;  %p101_p7 = scmp.lt.s32.totalorder %s95_s16, %s95_s16 }
  0x10   :  { %p102_p8 = por %p101_p7, %p100_p6 }
  0x12   :  { %p103_p9 = pnand %p102_p8, %p96_p5 }
  0x14   :  { %106 = shalt.err (!%p103_p9)
}
  0x15   :  { %29 = dma.hbm_to_vmem [thread:$0]  %s162_s1, 128, %s27_s12, [#allocation6]  }
  0x16   :  { %127 = dma.done.wait [#allocation3], 128  }
  0x17   :  { %128 = vsyncadd [#allocation3], 4294967168 }
  0x18   :  { %129 = dma.done.wait [#allocation6], 128  }
  0x19   :  { %130 = vsyncadd [#allocation6], 4294967168  ;;  %v37_v0 = vld [vmem:[#allocation5] sm:$0xff]  ;;  %s135_s19 = smov 32   ;;  %vm42_vm0 = vcmask 261120   ;;  %v36_v1 = vld [vmem:[#allocation2] sm:$0xff] }
  0x1a   :  { %39 = vrot.lane.b32.xlu0 %v37_v0, %s135_s19  ;;  %s136_s0 = smov [#allocation7]   ;;  %vm45_vm1 = vcmask 523264  }
  0x1b   :  { %s53_s20 = sshll.u32 %s136_s0, 4  ;;  %s54_s20 = int_to_ptr.vmem [resolvable:$true] %s53_s20 }
  0x1c   :  { %s107_s21 = scalar_lea.vmem %s54_s20, 128  ;;  %p112_p11 = scmp.lt.s32.totalorder %s54_s20, %s54_s20 }
  0x1d   :  { %p108_p10 = scmp.ne.s32.totalorder %s54_s20, %s107_s21  ;;  %p113_p12 = scmp.lt.s32.totalorder %s107_s21, %s107_s21 }
  0x1f   :  { %p114_p13 = por %p113_p12, %p112_p11 }
  0x21   :  { %p115_p0 = pnand %p114_p13, %p108_p10 }
  0x8c   :  { %v40_v2 = vpop.permute.xlu0 %39 }
  0x8d   :  { %v43_v3 = vsel %vm42_vm0, %v37_v0, %v40_v2 }
  0x8e   :  { %v44_v4 = vadd.f32 %v43_v3, %v36_v1 }
  0x90   :  { %46 = vst.msk [vmem:[#allocation7] sm:$0xff] %vm45_vm1, %v44_v4 }
  0x91   :  { %118 = shalt.err (!%p115_p0)
}
  0x92   :  { %56 = dma.vmem_to_hbm [thread:$0]  %s54_s20, 128, %s163_s2, [#allocation4]  }
  0x93   :  { %131 = dma.done.wait [#allocation4], 128  }
  0x94   :  { %132 = vsyncadd [#allocation4], 4294967168 }
  0x95   :  { %60 = vsyncpa [#allocation3], 1 }
  0x96   :  { %61 = vsyncpa [#allocation6], 1 }
  0x97   :  { %62 = vsyncpa [#allocation4], 1 }

</bundles_post_ra>
